<compile_context>
chip_gen: v6e
topology: v6e:2x2x1
jax: 0.10.0
libtpu: 0.0.40
codegen_flags: <defaults>
</compile_context>

<pallas_src>
import jax
import jax.numpy as jnp
from jax import lax
from jax.experimental import pallas as pl
from jax.experimental.pallas import tpu as pltpu


def mlp_kernel(x_ref, w1_ref, b1_ref, w2_ref, b2_ref,
               w3_ref, b3_ref, w4_ref, b4_ref, o_ref):
    # x block arrives in its native (batch, features) layout; the first
    # dot_general contracts over features so batch maps to the lane axis of
    # the (H, Bt) result — no host-side transpose / extra HBM round trip.
    x_blk = x_ref[...].astype(jnp.bfloat16)                      # (Bt, F)

    # Layer 1: Linear(F, H) + ReLU   (Dropout = identity in eval)
    h = lax.dot_general(
        w1_ref[...], x_blk,                                      # (H,F)x(Bt,F)
        dimension_numbers=(((1,), (1,)), ((), ())),
        preferred_element_type=jnp.float32) + b1_ref[...]        # (H, Bt) f32
    h = jnp.maximum(h, 0.0)

    # Layer 2: Linear(H, H) + ReLU   (bf16 MXU operands, f32 accumulate)
    h = jnp.dot(w2_ref[...], h.astype(jnp.bfloat16),
                preferred_element_type=jnp.float32) + b2_ref[...]
    h = jnp.maximum(h, 0.0)

    # Layer 3: Linear(H, H) + ReLU
    h = jnp.dot(w3_ref[...], h.astype(jnp.bfloat16),
                preferred_element_type=jnp.float32) + b3_ref[...]
    h = jnp.maximum(h, 0.0)

    # Layer 4: Linear(H, 1) + Sigmoid as VPU multiply + XLU sublane reduction
    # (avoids an N=1 MXU pass; result is a lane-dense (1, Bt) row).
    # Scaling note: for H >~ 256 move this back to an MXU dot ((1,H)@(H,Bt)).
    z = jnp.sum(h * w4_ref[...], axis=0, keepdims=True) + b4_ref[0]
    o_ref[...] = jax.nn.sigmoid(z).astype(o_ref.dtype)


def _pick_batch_tile(b_padded, cap=4096):
    """Largest lane-aligned (multiple-of-128) divisor of b_padded, capped at
    `cap` (VMEM / v5e store-epilogue comfort), preferring an even tile count
    >= 2 so v7x's two TensorCores both get work on the "parallel" axis."""
    best = 128
    best_even = None
    t = 128
    limit = min(cap, b_padded)
    while t <= limit:
        if b_padded % t == 0:
            best = t
            if (b_padded // t) % 2 == 0:      # >= 2 tiles, evenly splittable
                best_even = t
        t += 128
    return best_even if best_even is not None else best


def classifier_forward(x, kp, *, batch_tile=None):
    """x: (B, F) float32 (PyTorch 2-D Linear input). Returns (B, 1) float32."""
    B, F = x.shape
    H = kp["w1"].shape[0]
    assert kp["w1"].shape == (H, F)

    # Pad batch to a lane multiple: full-lane unmasked loads/stores.
    b_pad = ((B + 127) // 128) * 128
    if b_pad != B:
        x = jnp.pad(x, ((0, b_pad - B), (0, 0)))

    if batch_tile is None:
        batch_tile = _pick_batch_tile(b_pad)
    assert batch_tile % 128 == 0, "batch_tile must be a multiple of 128"
    assert b_pad % batch_tile == 0, "padded batch must divide by batch_tile"
    num_tiles = b_pad // batch_tile

    in_specs = [
        pl.BlockSpec((batch_tile, F), lambda i: (i, 0)),      # x, native layout
        pl.BlockSpec((H, F), lambda i: (0, 0)),               # w1 (bf16)
        pl.BlockSpec((H, 1), lambda i: (0, 0)),               # b1 column (f32)
        pl.BlockSpec((H, H), lambda i: (0, 0)),               # w2 (bf16)
        pl.BlockSpec((H, 1), lambda i: (0, 0)),               # b2
        pl.BlockSpec((H, H), lambda i: (0, 0)),               # w3 (bf16)
        pl.BlockSpec((H, 1), lambda i: (0, 0)),               # b3
        pl.BlockSpec((H, 1), lambda i: (0, 0)),               # w4 column (f32)
        pl.BlockSpec(memory_space=pltpu.MemorySpace.SMEM),    # b4 scalar
    ]
    out_specs = pl.BlockSpec((1, batch_tile), lambda i: (0, i))  # lane-dense

    out_t = pl.pallas_call(
        mlp_kernel,
        out_shape=jax.ShapeDtypeStruct((1, b_pad), jnp.float32),
        grid=(num_tiles,),
        in_specs=in_specs,
        out_specs=out_specs,
        compiler_params=pltpu.CompilerParams(
            dimension_semantics=("parallel",),     # megacore / v7x 2-TC shard
            vmem_limit_bytes=32 * 1024 * 1024),    # ample headroom on all gens
    )(x, kp["w1"], kp["b1"], kp["w2"], kp["b2"],
      kp["w3"], kp["b3"], kp["w4"], kp["b4"])

    return out_t[0, :B].reshape(B, 1)


def init_params(key, n_features, n_hidden):
    """PyTorch nn.Linear layout + init: w (out, in), b (out,), U(+-1/sqrt(in))."""
    def linear(k, fan_in, fan_out):
        kw, kb = jax.random.split(k)
        bound = 1.0 / jnp.sqrt(fan_in)
        w = jax.random.uniform(kw, (fan_out, fan_in), jnp.float32, -bound, bound)
        b = jax.random.uniform(kb, (fan_out,), jnp.float32, -bound, bound)
        return w, b

    k1, k2, k3, k4 = jax.random.split(key, 4)
    w1, b1 = linear(k1, n_features, n_hidden)
    w2, b2 = linear(k2, n_hidden, n_hidden)
    w3, b3 = linear(k3, n_hidden, n_hidden)
    w4, b4 = linear(k4, n_hidden, 1)
    return dict(w1=w1, b1=b1, w2=w2, b2=b2, w3=w3, b3=b3, w4=w4, b4=b4)


def prepare_params(p):
    """Kernel-side layouts: bf16 MXU weights, column biases, (H,1) w4 column
    for the VPU head, scalar b4 for SMEM."""
    return dict(
        w1=p["w1"].astype(jnp.bfloat16),
        w2=p["w2"].astype(jnp.bfloat16),
        w3=p["w3"].astype(jnp.bfloat16),
        b1=p["b1"].reshape(-1, 1).astype(jnp.float32),
        b2=p["b2"].reshape(-1, 1).astype(jnp.float32),
        b3=p["b3"].reshape(-1, 1).astype(jnp.float32),
        w4=p["w4"].T.astype(jnp.float32),          # (H, 1)
        b4=p["b4"].reshape(1).astype(jnp.float32),  # (1,)
    )


def reference_forward(x, p):
    """Pure-JAX f32 reference matching the PyTorch module (eval mode)."""
    h = jnp.maximum(x @ p["w1"].T + p["b1"], 0.0)
    h = jnp.maximum(h @ p["w2"].T + p["b2"], 0.0)
    h = jnp.maximum(h @ p["w3"].T + p["b3"], 0.0)
    return jax.nn.sigmoid(h @ p["w4"].T + p["b4"])          # (B, 1)


if __name__ == "__main__":
    n_features = 16
    n_hidden = 32
    batch = 16

    key = jax.random.PRNGKey(0)
    kx, kp = jax.random.split(key)
    x = jax.random.normal(kx, (batch, n_features), dtype=jnp.float32)
    params = init_params(kp, n_features, n_hidden)
    kernel_params = prepare_params(params)

    out = classifier_forward(x, kernel_params)
    out = jax.block_until_ready(out)

    ref = reference_forward(x, params)
    assert out.shape == (batch, 1)
    # bf16 MXU operands with f32 accumulation -> loosened tolerance vs f32 ref.
    assert jnp.allclose(out, ref, atol=2e-2, rtol=2e-2), (
        "max abs err = %g" % float(jnp.max(jnp.abs(out - ref))))

    print("KERNEL_OK")
</pallas_src>

<mosaic_0001>
module attributes {stable_mosaic.version = 11 : i64} {
  func.func @mlp_kernel(%arg0: i32, %arg1: memref<128x16xf32, #tpu.memory_space<vmem>>, %arg2: memref<32x16xbf16, #tpu.memory_space<vmem>>, %arg3: memref<32x1xf32, #tpu.memory_space<vmem>>, %arg4: memref<32x32xbf16, #tpu.memory_space<vmem>>, %arg5: memref<32x1xf32, #tpu.memory_space<vmem>>, %arg6: memref<32x32xbf16, #tpu.memory_space<vmem>>, %arg7: memref<32x1xf32, #tpu.memory_space<vmem>>, %arg8: memref<32x1xf32, #tpu.memory_space<vmem>>, %arg9: memref<1xf32, #tpu.memory_space<smem>>, %arg10: memref<1x128xf32, #tpu.memory_space<vmem>>) attributes {dimension_semantics = [#tpu.dimension_semantics<parallel>], iteration_bounds = array<i64: 1>, scalar_prefetch = 0 : i64, scratch_operands = 0 : i64, tpu.core_type = #tpu.core_type<tc>, window_params = [{transform_indices = @transform_0, window_bounds = array<i64: 128, 16>}, {pipeline_mode = #tpu.pipeline_mode<synchronous>, transform_indices = @transform_1, window_bounds = array<i64: 32, 16>}, {pipeline_mode = #tpu.pipeline_mode<synchronous>, transform_indices = @transform_2, window_bounds = array<i64: 32, 1>}, {pipeline_mode = #tpu.pipeline_mode<synchronous>, transform_indices = @transform_3, window_bounds = array<i64: 32, 32>}, {pipeline_mode = #tpu.pipeline_mode<synchronous>, transform_indices = @transform_4, window_bounds = array<i64: 32, 1>}, {pipeline_mode = #tpu.pipeline_mode<synchronous>, transform_indices = @transform_5, window_bounds = array<i64: 32, 32>}, {pipeline_mode = #tpu.pipeline_mode<synchronous>, transform_indices = @transform_6, window_bounds = array<i64: 32, 1>}, {pipeline_mode = #tpu.pipeline_mode<synchronous>, transform_indices = @transform_7, window_bounds = array<i64: 32, 1>}, {transform_indices = @transform_8, window_bounds = array<i64: 1>}, {transform_indices = @transform_9, window_bounds = array<i64: 1, 128>}]} {
    %c0 = arith.constant 0 : index
    %c0_0 = arith.constant 0 : index
    %0 = vector.load %arg1[%c0, %c0_0] : memref<128x16xf32, #tpu.memory_space<vmem>>, vector<128x16xf32>
    %1 = arith.truncf %0 : vector<128x16xf32> to vector<128x16xbf16>
    %c0_1 = arith.constant 0 : index
    %c0_2 = arith.constant 0 : index
    %2 = vector.load %arg2[%c0_1, %c0_2] : memref<32x16xbf16, #tpu.memory_space<vmem>>, vector<32x16xbf16>
    %cst = arith.constant dense<0.000000e+00> : vector<32x128xf32>
    %3 = tpu.matmul %2, %1, %cst {dimension_numbers = #tpu.dot_dimension_numbers<[1], [1], [0], [0], [0, 0, 1, 0], [], []>} : vector<32x16xbf16>, vector<128x16xbf16>, vector<32x128xf32> -> vector<32x128xf32>
    %c0_3 = arith.constant 0 : index
    %c0_4 = arith.constant 0 : index
    %4 = vector.load %arg3[%c0_3, %c0_4] : memref<32x1xf32, #tpu.memory_space<vmem>>, vector<32x1xf32>
    %5 = vector.broadcast %4 : vector<32x1xf32> to vector<32x128xf32>
    %6 = arith.addf %3, %5 : vector<32x128xf32>
    %cst_5 = arith.constant 0.000000e+00 : f32
    %7 = vector.broadcast %cst_5 : f32 to vector<32x128xf32>
    %8 = arith.maximumf %6, %7 : vector<32x128xf32>
    %c0_6 = arith.constant 0 : index
    %c0_7 = arith.constant 0 : index
    %9 = vector.load %arg4[%c0_6, %c0_7] : memref<32x32xbf16, #tpu.memory_space<vmem>>, vector<32x32xbf16>
    %10 = arith.truncf %8 : vector<32x128xf32> to vector<32x128xbf16>
    %cst_8 = arith.constant dense<0.000000e+00> : vector<32x128xf32>
    %11 = tpu.matmul %9, %10, %cst_8 {dimension_numbers = #tpu.dot_dimension_numbers<[1], [0], [0], [1], [0, 0, 1, 1], [], []>} : vector<32x32xbf16>, vector<32x128xbf16>, vector<32x128xf32> -> vector<32x128xf32>
    %c0_9 = arith.constant 0 : index
    %c0_10 = arith.constant 0 : index
    %12 = vector.load %arg5[%c0_9, %c0_10] : memref<32x1xf32, #tpu.memory_space<vmem>>, vector<32x1xf32>
    %13 = vector.broadcast %12 : vector<32x1xf32> to vector<32x128xf32>
    %14 = arith.addf %11, %13 : vector<32x128xf32>
    %cst_11 = arith.constant 0.000000e+00 : f32
    %15 = vector.broadcast %cst_11 : f32 to vector<32x128xf32>
    %16 = arith.maximumf %14, %15 : vector<32x128xf32>
    %c0_12 = arith.constant 0 : index
    %c0_13 = arith.constant 0 : index
    %17 = vector.load %arg6[%c0_12, %c0_13] : memref<32x32xbf16, #tpu.memory_space<vmem>>, vector<32x32xbf16>
    %18 = arith.truncf %16 : vector<32x128xf32> to vector<32x128xbf16>
    %cst_14 = arith.constant dense<0.000000e+00> : vector<32x128xf32>
    %19 = tpu.matmul %17, %18, %cst_14 {dimension_numbers = #tpu.dot_dimension_numbers<[1], [0], [0], [1], [0, 0, 1, 1], [], []>} : vector<32x32xbf16>, vector<32x128xbf16>, vector<32x128xf32> -> vector<32x128xf32>
    %c0_15 = arith.constant 0 : index
    %c0_16 = arith.constant 0 : index
    %20 = vector.load %arg7[%c0_15, %c0_16] : memref<32x1xf32, #tpu.memory_space<vmem>>, vector<32x1xf32>
    %21 = vector.broadcast %20 : vector<32x1xf32> to vector<32x128xf32>
    %22 = arith.addf %19, %21 : vector<32x128xf32>
    %cst_17 = arith.constant 0.000000e+00 : f32
    %23 = vector.broadcast %cst_17 : f32 to vector<32x128xf32>
    %24 = arith.maximumf %22, %23 : vector<32x128xf32>
    %c0_18 = arith.constant 0 : index
    %c0_19 = arith.constant 0 : index
    %25 = vector.load %arg8[%c0_18, %c0_19] : memref<32x1xf32, #tpu.memory_space<vmem>>, vector<32x1xf32>
    %26 = vector.broadcast %25 : vector<32x1xf32> to vector<32x128xf32>
    %27 = arith.mulf %24, %26 : vector<32x128xf32>
    %cst_20 = arith.constant dense<0.000000e+00> : vector<128xf32>
    %28 = vector.multi_reduction <add>, %27, %cst_20 [0] : vector<32x128xf32> to vector<128xf32>
    %29 = vector.shape_cast %28 : vector<128xf32> to vector<1x128xf32>
    %c0_21 = arith.constant 0 : index
    %30 = memref.load %arg9[%c0_21] : memref<1xf32, #tpu.memory_space<smem>>
    %31 = vector.broadcast %30 : f32 to vector<1x128xf32>
    %32 = arith.addf %29, %31 : vector<1x128xf32>
    %33 = arith.negf %32 : vector<1x128xf32>
    %34 = math.exp %33 : vector<1x128xf32>
    %cst_22 = arith.constant 1.000000e+00 : f32
    %35 = vector.broadcast %cst_22 : f32 to vector<1x128xf32>
    %36 = arith.addf %35, %34 : vector<1x128xf32>
    %37 = arith.divf %35, %36 : vector<1x128xf32>
    %c0_23 = arith.constant 0 : index
    %c0_24 = arith.constant 0 : index
    %38 = vector.load %arg10[%c0_23, %c0_24] : memref<1x128xf32, #tpu.memory_space<vmem>>, vector<1x128xf32>
    tpu.vector_store %arg10[%c0_23, %c0_24], %37 {strides = array<i32>} : memref<1x128xf32, #tpu.memory_space<vmem>>, vector<1x128xf32>,
    return
  }
  func.func @transform_0(%arg0: i32) -> (i32, i32) {
    %c0_i32 = arith.constant 0 : i32
    %c0_i32_0 = arith.constant 0 : i32
    return %arg0, %c0_i32 : i32, i32
  }
  func.func @transform_1(%arg0: i32) -> (i32, i32) {
    %c0_i32 = arith.constant 0 : i32
    %c0_i32_0 = arith.constant 0 : i32
    %c0_i32_1 = arith.constant 0 : i32
    return %c0_i32, %c0_i32_0 : i32, i32
  }
  func.func @transform_2(%arg0: i32) -> (i32, i32) {
    %c0_i32 = arith.constant 0 : i32
    %c0_i32_0 = arith.constant 0 : i32
    %c0_i32_1 = arith.constant 0 : i32
    return %c0_i32, %c0_i32_0 : i32, i32
  }
  func.func @transform_3(%arg0: i32) -> (i32, i32) {
    %c0_i32 = arith.constant 0 : i32
    %c0_i32_0 = arith.constant 0 : i32
    %c0_i32_1 = arith.constant 0 : i32
    return %c0_i32, %c0_i32_0 : i32, i32
  }
  func.func @transform_4(%arg0: i32) -> (i32, i32) {
    %c0_i32 = arith.constant 0 : i32
    %c0_i32_0 = arith.constant 0 : i32
    %c0_i32_1 = arith.constant 0 : i32
    return %c0_i32, %c0_i32_0 : i32, i32
  }
  func.func @transform_5(%arg0: i32) -> (i32, i32) {
    %c0_i32 = arith.constant 0 : i32
    %c0_i32_0 = arith.constant 0 : i32
    %c0_i32_1 = arith.constant 0 : i32
    return %c0_i32, %c0_i32_0 : i32, i32
  }
  func.func @transform_6(%arg0: i32) -> (i32, i32) {
    %c0_i32 = arith.constant 0 : i32
    %c0_i32_0 = arith.constant 0 : i32
    %c0_i32_1 = arith.constant 0 : i32
    return %c0_i32, %c0_i32_0 : i32, i32
  }
  func.func @transform_7(%arg0: i32) -> (i32, i32) {
    %c0_i32 = arith.constant 0 : i32
    %c0_i32_0 = arith.constant 0 : i32
    %c0_i32_1 = arith.constant 0 : i32
    return %c0_i32, %c0_i32_0 : i32, i32
  }
  func.func @transform_8(%arg0: i32) -> i32 {
    %c0_i32 = arith.constant 0 : i32
    %c0_i32_0 = arith.constant 0 : i32
    return %c0_i32 : i32
  }
  func.func @transform_9(%arg0: i32) -> (i32, i32) {
    %c0_i32 = arith.constant 0 : i32
    %c0_i32_0 = arith.constant 0 : i32
    return %c0_i32, %arg0 : i32, i32
  }
}

</mosaic_0001>

<bundles_post_ra>
// kernel: tpu_custom_call.1
= control target key start
LH: loop header
LB: loop body
LE: loop exit
PB: predicated region body
PF: predicated region fallthrough
CT: control target
= control target key end

     0   :  { %vm97_vm0 = vcmask 130048   ;;  %v552_v5 = vmov 0   ;;  %s746_s0 = inlined_call_operand.vmem [shape: f32[128,16], index: 0, kind: input, shape index: {}]   ;;  %s747_s1 = inlined_call_operand.vmem [shape: bf16[32,16], index: 1, kind: input, shape index: {}]   ;;  %s748_s2 = inlined_call_operand.vmem [shape: f32[32,1], index: 2, kind: input, shape index: {}]   ;;  %s749_s3 = inlined_call_operand.vmem [shape: bf16[32,32], index: 3, kind: input, shape index: {}]   ;;  %s750_s4 = inlined_call_operand.vmem [shape: f32[32,1], index: 4, kind: input, shape index: {}]   ;;  %s751_s5 = inlined_call_operand.vmem [shape: bf16[32,32], index: 5, kind: input, shape index: {}]   ;;  %s752_s6 = inlined_call_operand.vmem [shape: f32[32,1], index: 6, kind: input, shape index: {}]   ;;  %s753_s7 = inlined_call_operand.vmem [shape: f32[32,1], index: 7, kind: input, shape index: {}]   ;;  %s754_s8 = inlined_call_operand.<no memory space> [shape: f32[1], index: 8, kind: input, shape index: {}]   ;;  %s755_s9 = inlined_call_operand.hbm [shape: f32[1,128], index: 9, kind: output, shape index: {}]  }
   0x1   :  { %v49_v0 = vld [vmem:[%s746_s0 + $0x70] sm:$0xff]  ;;  %v50_v1 = vld [vmem:[%s746_s0 + $0x78] sm:$0xff]  ;;  %v47_v2 = vld [vmem:[%s746_s0 + $0x60] sm:$0xff]  ;;  %518 = vset.pattern.permute.xlu0 %v552_v5  ;;  %519 = vset.pattern.permute.xlu1 %v552_v5 }
   0x2   :  { %v58_v3 = vpack.c.bf16 %v50_v1, %v49_v0  ;;  %v48_v4 = vld [vmem:[%s746_s0 + $0x68] sm:$0xff]  ;;  %v45_v8 = vld [vmem:[%s746_s0 + $0x50] sm:$0xff]  ;;  %v46_v9 = vld [vmem:[%s746_s0 + $0x58] sm:$0xff] }
   0x3   :  { %v57_v6 = vpack.c.bf16 %v48_v4, %v47_v2  ;;  %v520_v10 = vld [vmem:[%s747_s1] sm:$0xff]   ;;  %v65_v11 = vld [vmem:[%s748_s2 + $0x10] sm:$0xff]  ;;  %v56_v14 = vpack.c.bf16 %v46_v9, %v45_v8  ;;  %v66_v15 = vld [vmem:[%s748_s2 + $0x18] sm:$0xff] }
   0x4   :  { %508 = vmatprep.subr.msk.bf16.mxu0 %vm97_vm0, %v58_v3  ;;  %v126_v7 = vsel %vm97_vm0, %v58_v3, 0  ;;  %488 = vmatprep.mubr.msk.bf16.mxu0 %vm97_vm0, %v520_v10  ;;  %v63_v12 = vld [vmem:[%s748_s2] sm:$0xff]  ;;  %v64_v16 = vld [vmem:[%s748_s2 + $0x8] sm:$0xff]  ;;  %v189_v19 = vld [vmem:[%s750_s4 + $0x10] sm:$0xff] }
   0x5   :  { %473 = vmatpush3.bf16.xpose.msra.mxu0 %v126_v7  ;;  %79 = vperm.xlu0 %518, %v65_v11   ;;  %v123_v13 = vsel %vm97_vm0, %v57_v6, 0  ;;  %v43_v17 = vld [vmem:[%s746_s0 + $0x40] sm:$0xff]  ;;  %v44_v18 = vld [vmem:[%s746_s0 + $0x48] sm:$0xff]  ;;  %v190_v20 = vld [vmem:[%s750_s4 + $0x18] sm:$0xff] }
   0x6   :  { %509 = vmatprep.subr.msk.bf16.mxu0 %vm97_vm0, %v57_v6  ;;  %69 = vperm.xlu1 %519, %v63_v12  }
   0x9   :  { %84 = vperm.xlu0 %518, %v66_v15  }
   0xa   :  { %74 = vperm.xlu1 %519, %v64_v16  }
   0xd   :  { %475 = vmatpush3.bf16.xpose.msra.mxu0 %v123_v13 }
   0xe   :  { %510 = vmatprep.subr.msk.bf16.mxu0 %vm97_vm0, %v56_v14 }
   0xf   :  { %15 = vsyncpa [#allocation4], 0  ;;  %203 = vperm.xlu0 %518, %v189_v19   ;;  %v120_v21 = vsel %vm97_vm0, %v56_v14, 0  ;;  %v55_v22 = vpack.c.bf16 %v44_v18, %v43_v17  ;;  %v187_v23 = vld [vmem:[%s750_s4] sm:$0xff]  ;;  %208 = vperm.xlu1 %519, %v190_v20   ;;  %v188_v24 = vld [vmem:[%s750_s4 + $0x8] sm:$0xff]  ;;  %vm221_vm1 = vcmask 261120  }
  0x10   :  { %v287_v25 = vld [vmem:[%s752_s6] sm:$0xff]  ;;  %v41_v26 = vld [vmem:[%s746_s0 + $0x30] sm:$0xff]  ;;  %v42_v27 = vld [vmem:[%s746_s0 + $0x38] sm:$0xff]  ;;  %s553_s14 = smov [#allocation3]  }
  0x11   :  { %v288_v28 = vld [vmem:[%s752_s6 + $0x8] sm:$0xff]  ;;  %v117_v29 = vsel %vm97_vm0, %v55_v22, 0  ;;  %v54_v30 = vpack.c.bf16 %v42_v27, %v41_v26  ;;  %v289_v31 = vld [vmem:[%s752_s6 + $0x10] sm:$0xff]  ;;  %v290_v32 = vld [vmem:[%s752_s6 + $0x18] sm:$0xff]  ;;  %s433_s15 = sshll.u32 %s553_s14, 4  ;;  %s434_s15 = int_to_ptr.vmem [resolvable:$true] %s433_s15 }
  0x12   :  { %v380_v33 = vld [vmem:[%s753_s7] sm:$0xff]  ;;  %v40_v35 = vld [vmem:[%s746_s0 + $0x28] sm:$0xff]  ;;  %v382_v39 = vld [vmem:[%s753_s7 + $0x10] sm:$0xff]  ;;  %s530_s16 = scalar_lea.vmem %s434_s15, 16  ;;  %s534_s17 = scalar_lea.vmem %s434_s15, 32 }
  0x13   :  { %193 = vperm.xlu0 %518, %v187_v23   ;;  %198 = vperm.xlu1 %519, %v188_v24   ;;  %v39_v34 = vld [vmem:[%s746_s0 + $0x20] sm:$0xff]  ;;  %v381_v36 = vld [vmem:[%s753_s7 + $0x8] sm:$0xff]  ;;  %v114_v37 = vsel %vm97_vm0, %v54_v30, 0  ;;  %v383_v40 = vld [vmem:[%s753_s7 + $0x18] sm:$0xff]  ;;  %p531_p0 = scmp.ne.s32.totalorder %s434_s15, %s530_s16  ;;  %p535_p1 = scmp.lt.s32.totalorder %s434_s15, %s434_s15 }
  0x14   :  { %v53_v38 = vpack.c.bf16 %v40_v35, %v39_v34  ;;  %v37_v41 = vld [vmem:[%s746_s0 + $0x10] sm:$0xff]  ;;  %v38_v42 = vld [vmem:[%s746_s0 + $0x18] sm:$0xff]  ;;  %v35_v45 = vld [vmem:[%s746_s0] sm:$0xff]  ;;  %p536_p2 = scmp.lt.s32.totalorder %s534_s17, %s530_s16 }
  0x15   :  { %477 = vmatpush3.bf16.xpose.msra.mxu0 %v120_v21  ;;  %v52_v44 = vpack.c.bf16 %v38_v42, %v37_v41  ;;  %v36_v46 = vld [vmem:[%s746_s0 + $0x8] sm:$0xff]  ;;  %v522_v51 = vld [vmem:[%s749_s3] sm:$0xff]  }
  0x16   :  { %511 = vmatprep.subr.msk.bf16.mxu0 %vm97_vm0, %v55_v22  ;;  %v111_v43 = vsel %vm97_vm0, %v53_v38, 0  ;;  %v51_v48 = vpack.c.bf16 %v36_v46, %v35_v45  ;;  %v521_v50 = vld [vmem:[%s747_s1 + $0x8] sm:$0xff]   ;;  %496 = vmatprep.mubr.msk.bf16.mxu1 %vm221_vm1, %v522_v51  ;;  %v524_v7 = vld [vmem:[%s751_s5] sm:$0xff]   ;;  %p537_p3 = por %p536_p2, %p535_p1 }
  0x17   :  { %293 = vperm.xlu0 %518, %v287_v25   ;;  %298 = vperm.xlu1 %519, %v288_v28   ;;  %v108_v47 = vsel %vm97_vm0, %v52_v44, 0  ;;  %v523_v6 = vld [vmem:[%s749_s3 + $0x8] sm:$0xff]  }
  0x18   :  { %v105_v49 = vsel %vm97_vm0, %v51_v48, 0  ;;  %v525_v26 = vld [vmem:[%s751_s5 + $0x8] sm:$0xff]   ;;  %p538_p4 = pnand %p537_p3, %p531_p0 }
  0x1b   :  { %303 = vperm.xlu0 %518, %v289_v31   ;;  %308 = vperm.xlu1 %519, %v290_v32  }
  0x1d   :  { %479 = vmatpush3.bf16.xpose.msra.mxu0 %v117_v29 }
  0x1e   :  { %512 = vmatprep.subr.msk.bf16.mxu0 %vm97_vm0, %v54_v30 }
  0x1f   :  { %386 = vperm.xlu0 %518, %v380_v33   ;;  %391 = vperm.xlu1 %519, %v381_v36  }
  0x23   :  { %396 = vperm.xlu0 %518, %v382_v39   ;;  %401 = vperm.xlu1 %519, %v383_v40  }
  0x25   :  { %481 = vmatpush3.bf16.xpose.msra.mxu0 %v114_v37 }
  0x26   :  { %513 = vmatprep.subr.msk.bf16.mxu0 %vm97_vm0, %v53_v38 }
  0x2d   :  { %483 = vmatpush3.bf16.xpose.msra.mxu0 %v111_v43 }
  0x2e   :  { %514 = vmatprep.subr.msk.bf16.mxu0 %vm97_vm0, %v52_v44 }
  0x35   :  { %485 = vmatpush3.bf16.xpose.msra.mxu0 %v108_v47 }
  0x36   :  { %515 = vmatprep.subr.msk.bf16.mxu0 %vm97_vm0, %v51_v48 }
  0x3d   :  { %487 = vmatpush3.bf16.xpose.msra.mxu0 %v105_v49 }
  0x44   :  { %489 = vmatmul.mubr.msk.bf16.vlgmr.msra.gmra.mxu0 %vm97_vm0, %v521_v50 }
  0x80   :  { %v80_v52 = vpop.permute.xlu0 %79 }
  0x81   :  { %v70_v53 = vpop.permute.xlu1 %69 }
  0x84   :  { %v85_v57 = vpop.permute.xlu0 %84 }
  0x85   :  { %v75_v61 = vpop.permute.xlu1 %74 }
  0x8a   :  { %v204_v8 = vpop.permute.xlu0 %203  ;;  %v209_v9 = vpop.permute.xlu1 %208 }
  0x8e   :  { %v194_v13 = vpop.permute.xlu0 %193  ;;  %v199_v17 = vpop.permute.xlu1 %198 }
  0x92   :  { %v294_v27 = vpop.permute.xlu0 %293  ;;  %v299_v28 = vpop.permute.xlu1 %298 }
  0x96   :  { %v304_v29 = vpop.permute.xlu0 %303  ;;  %v309_v31 = vpop.permute.xlu1 %308 }
  0x9a   :  { %v387_v36 = vpop.permute.xlu0 %386  ;;  %v392_v41 = vpop.permute.xlu1 %391 }
  0x9e   :  { %v397_v47 = vpop.permute.xlu0 %396  ;;  %v402_v50 = vpop.permute.xlu1 %401 }
 0x104   :  { %v490_v54 = vpop.f32.mrf.mxu0 }
 0x105   :  { %v171_v56 = vadd.f32 %v490_v54, %v80_v52 }
 0x106   :  { %v162_v55 = vpop.f32.mrf.mxu0 }
 0x107   :  { %v163_v59 = vadd.f32 %v162_v55, %v70_v53  ;;  %v179_v63 = vmax.f32 %v171_v56, 0.0 }
 0x108   :  { %v491_v58 = vpop.f32.mrf.mxu0 }
 0x109   :  { %v174_v60 = vadd.f32 %v491_v58, %v85_v57  ;;  %v177_v2 = vmax.f32 %v163_v59, 0.0  ;;  %v418_v59 = vstv %s754_s8 }
 0x10a   :  { %v165_v62 = vpop.f32.mrf.mxu0 }
 0x10b   :  { %v180_v0 = vmax.f32 %v174_v60, 0.0  ;;  %v166_v1 = vadd.f32 %v165_v62, %v75_v61 }
 0x10d   :  { %v178_v3 = vmax.f32 %v166_v1, 0.0  ;;  %v186_v4 = vpack.c.bf16 %v180_v0, %v179_v63 }
 0x10f   :  { %v185_v5 = vpack.c.bf16 %v178_v3, %v177_v2  ;;  %492 = vmatprep.subr.bf16.mxu1 %v186_v4 }
 0x110   :  { %493 = vmatpush3.bf16.msra.mxu1 %v186_v4 }
 0x111   :  { %494 = vmatprep.subr.bf16.mxu1 %v185_v5 }
 0x114   :  { %495 = vmatpush3.bf16.msra.mxu1 %v185_v5 }
 0x117   :  { %497 = vmatmul.mubr.msk.bf16.vlgmr.msra.gmra.mxu1 %vm221_vm1, %v523_v6 }
 0x118   :  { %504 = vmatprep.mubr.msk.bf16.mxu1 %vm221_vm1, %v524_v7 }
 0x1d7   :  { %v498_v10 = vpop.f32.mrf.mxu1 }
 0x1d8   :  { %v271_v12 = vadd.f32 %v498_v10, %v204_v8 }
 0x1d9   :  { %v262_v11 = vpop.f32.mrf.mxu1 }
 0x1da   :  { %v263_v15 = vadd.f32 %v262_v11, %v194_v13  ;;  %v279_v19 = vmax.f32 %v271_v12, 0.0 }
 0x1db   :  { %v499_v14 = vpop.f32.mrf.mxu1 }
 0x1dc   :  { %v274_v16 = vadd.f32 %v499_v14, %v209_v9  ;;  %v277_v22 = vmax.f32 %v263_v15, 0.0 }
 0x1dd   :  { %v265_v18 = vpop.f32.mrf.mxu1 }
 0x1de   :  { %v280_v20 = vmax.f32 %v274_v16, 0.0  ;;  %v266_v21 = vadd.f32 %v265_v18, %v199_v17 }
 0x1e0   :  { %v286_v23 = vpack.c.bf16 %v280_v20, %v279_v19  ;;  %v278_v24 = vmax.f32 %v266_v21, 0.0 }
 0x1e2   :  { %v285_v25 = vpack.c.bf16 %v278_v24, %v277_v22  ;;  %500 = vmatprep.subr.bf16.mxu1 %v286_v23 }
 0x1e3   :  { %501 = vmatpush3.bf16.msra.mxu1 %v286_v23 }
 0x1e4   :  { %502 = vmatprep.subr.bf16.mxu1 %v285_v25 }
 0x1e7   :  { %503 = vmatpush3.bf16.msra.mxu1 %v285_v25 }
 0x1ea   :  { %505 = vmatmul.mubr.msk.bf16.vlgmr.msra.gmra.mxu1 %vm221_vm1, %v525_v26 }
 0x2aa   :  { %v506_v30 = vpop.f32.mrf.mxu1 }
 0x2ab   :  { %v370_v35 = vadd.f32 %v506_v30, %v304_v29 }
 0x2ac   :  { %v361_v32 = vpop.f32.mrf.mxu1 }
 0x2ad   :  { %v362_v33 = vadd.f32 %v361_v32, %v294_v27  ;;  %v378_v42 = vmax.f32 %v370_v35, 0.0 }
 0x2ae   :  { %v507_v34 = vpop.f32.mrf.mxu1 }
 0x2af   :  { %v376_v38 = vmax.f32 %v362_v33, 0.0  ;;  %v373_v39 = vadd.f32 %v507_v34, %v309_v31  ;;  %v406_v48 = vmul.f32 %v397_v47, %v378_v42 }
 0x2b0   :  { %v364_v37 = vpop.f32.mrf.mxu1 }
 0x2b1   :  { %v365_v40 = vadd.f32 %v364_v37, %v299_v28  ;;  %v404_v44 = vmul.f32 %v387_v36, %v376_v38  ;;  %v379_v45 = vmax.f32 %v373_v39, 0.0 }
 0x2b3   :  { %v377_v43 = vmax.f32 %v365_v40, 0.0  ;;  %v407_v51 = vmul.f32 %v402_v50, %v379_v45 }
 0x2b5   :  { %v405_v46 = vmul.f32 %v392_v41, %v377_v43 }
 0x2b7   :  { %v408_v49 = vadd.f32 %v405_v46, %v404_v44 }
 0x2b9   :  { %v409_v52 = vadd.f32 %v408_v49, %v406_v48 }
 0x2bb   :  { %v410_v53 = vadd.f32 %v409_v52, %v407_v51 }
 0x2bd   :  { %v411_v54 = vrot.slane %v410_v53, 4 }
 0x2bf   :  { %v412_v55 = vadd.f32 %v411_v54, %v410_v53 }
 0x2c1   :  { %v413_v56 = vrot.slane %v412_v55, 2 }
 0x2c3   :  { %v414_v57 = vadd.f32 %v413_v56, %v412_v55 }
 0x2c5   :  { %v415_v58 = vrot.slane %v414_v57, 1 }
 0x2c7   :  { %v416_v60 = vadd.f32 %v415_v58, %v414_v57 }
 0x2c9   :  { %v419_v61 = vadd.f32 %v418_v59, %v416_v60 }
 0x2cb   :  { %v453_v62 = vmul.f32 -1.442695, %v419_v61 }
 0x2cd   :  { %526 = vpow2.f32 %v453_v62 }
 0x2da   :  { %v527_v63 = vpop.eup %526 }
 0x2db   :  { %v423_v0 = vadd.f32 1.0, %v527_v63 }
 0x2dd   :  { %528 = vrcp.f32 %v423_v0 }
 0x2ea   :  { %v529_v1 = vpop.eup %528 }
 0x2eb   :  { %426 = vst [vmem:[#allocation3] sm:$0x1] %v529_v1 }
 0x2ec   :  { %541 = shalt.err (!%p538_p4)
}
 0x2ed   :  { %436 = dma.vmem_to_hbm [thread:$0]  %s434_s15, 16, %s755_s9, [#allocation4]  }
 0x2ee   :  { %550 = dma.done.wait [#allocation4], 16  }
 0x2ef   :  { %551 = vsyncadd [#allocation4], 4294967280 }
 0x2f0   :  { %440 = vsyncpa [#allocation4], 1 }

</bundles_post_ra>
